<compile_context>
chip_gen: v5e
topology: v5e:2x2
jax: 0.10.0
libtpu: 0.0.40
codegen_flags: <defaults>
</compile_context>

<pallas_src>
import functools

import jax
import jax.numpy as jnp
from jax import lax
from jax.experimental import pallas as pl
from jax.experimental.pallas import tpu as pltpu

LANE = 128


def _round_up(x, m):
    return ((x + m - 1) // m) * m


def _pick_tile(n, candidates):
    for c in candidates:
        if n % c == 0:
            return c
    return n  # n is a multiple of LANE by construction


def _pad2d(x, rows, cols):
    return jnp.pad(x, ((0, rows - x.shape[0]), (0, cols - x.shape[1])))


def _vmem_limit_bytes():
    """Per-generation scoped VMEM limit: ~48 MiB on v7x (64 MiB phys), ~96 MiB on v5e/v6e."""
    try:
        cap = int(pltpu.get_tpu_info().vmem_capacity_bytes)
    except Exception:
        cap = 64 * 1024 * 1024  # conservative (v7x-sized) fallback
    return max(32 * 1024 * 1024, min(cap * 3 // 4, 100 * 1024 * 1024))


def _sage_tile(n_pad, hid, vmem_limit):
    """Largest dst-row tile whose double-buffered footprint fits the VMEM budget."""
    budget = int(vmem_limit * 0.75)
    # fixed per-step: src slab (bf16, x2 buffers) + W (f32, x2) + bias
    fixed = 2 * (n_pad * hid * 2) + 2 * (2 * hid * hid * 4) + 2 * (hid * 4)
    for tm in (1024, 512, 256, 128):
        # per-tile: xd (bf16 x2) + out (bf16 x2) + f32 accumulator scratch
        if n_pad % tm == 0 and fixed + tm * hid * (4 + 4 + 4) <= budget:
            return tm
    return n_pad


# ---------------------------------------------------------------------------
# Kernel 1: movie encoder   out = movie_x @ W + b + movie_emb   (bf16 in/out)
# ---------------------------------------------------------------------------
def movie_encode_kernel(x_ref, w_ref, b_ref, emb_ref, o_ref):
    h = jnp.dot(x_ref[...], w_ref[...], preferred_element_type=jnp.float32)
    h = h + b_ref[...] + emb_ref[...].astype(jnp.float32)
    o_ref[...] = h.astype(o_ref.dtype)


def movie_encode(x, w, b, emb, vmem_limit):
    nm, f = x.shape
    hid = w.shape[1]
    tm = _pick_tile(nm, (1024, 512, 256, 128))
    grid = (nm // tm,)
    return pl.pallas_call(
        movie_encode_kernel,
        out_shape=jax.ShapeDtypeStruct((nm, hid), jnp.bfloat16),
        grid=grid,
        in_specs=[
            pl.BlockSpec((tm, f), lambda i: (i, 0)),
            pl.BlockSpec((f, hid), lambda i: (0, 0)),
            pl.BlockSpec((1, hid), lambda i: (0, 0)),
            pl.BlockSpec((tm, hid), lambda i: (i, 0)),
        ],
        out_specs=pl.BlockSpec((tm, hid), lambda i: (i, 0)),
        compiler_params=pltpu.CompilerParams(
            dimension_semantics=("parallel",),
            vmem_limit_bytes=vmem_limit),
    )(x, w, b, emb)


# ---------------------------------------------------------------------------
# Kernel 2: one full hetero SAGE layer for BOTH node types.
#   grid = (node_type t in {0:user-dst, 1:movie-dst}, dst-row tile i)
#   Sparse mean aggregation from CSR (scalar-prefetched offsets / indices):
#     acc[r,:] = (1/deg) * sum_{e in [off[dst], off[dst+1])} x_src[idx[e], :]
#   Fused self + neighbor transform (f32 epilogue, no concat):
#     h = acc @ W[:hid] + x_dst @ W[hid:] + b ; optional relu ; store bf16
# ---------------------------------------------------------------------------
def sage_kernel(off_ref, idx_ref, xs_ref, xd_ref, w_ref, b_ref, o_ref, acc_ref,
                *, apply_relu):
    t = pl.program_id(0)
    tm, hid = xd_ref.shape
    row0 = pl.program_id(1) * tm

    # ---- sparse mean aggregation into f32 scratch ---------------------------
    def row_body(r, carry):
        dst = row0 + r
        start = off_ref[t, dst]
        end = off_ref[t, dst + 1]

        def edge_body(e, acc_row):
            src = idx_ref[t, e]
            return acc_row + xs_ref[pl.ds(src, 1), :].astype(jnp.float32)

        acc_row = lax.fori_loop(start, end, edge_body,
                                jnp.zeros((1, hid), jnp.float32))
        inv_deg = 1.0 / jnp.maximum(end - start, 1).astype(jnp.float32)
        acc_ref[pl.ds(r, 1), :] = acc_row * inv_deg
        return carry

    lax.fori_loop(0, tm, row_body, 0)

    # ---- fused lin_l(agg) + lin_r(x_dst) + b, f32 accumulation ---------------
    h = jnp.dot(acc_ref[...], w_ref[0:hid, :],
                preferred_element_type=jnp.float32)
    h = h + jnp.dot(xd_ref[...].astype(jnp.float32), w_ref[hid:2 * hid, :],
                    preferred_element_type=jnp.float32)
    h = h + b_ref[...]
    if apply_relu:
        h = jnp.maximum(h, 0.0)
    o_ref[...] = h.astype(o_ref.dtype)


def sage_layer(x_stack, off, idx, w_stack, b_stack, *, apply_relu, vmem_limit):
    _, n_pad, hid = x_stack.shape
    tm = _sage_tile(n_pad, hid, vmem_limit)
    grid = (2, n_pad // tm)
    kern = functools.partial(sage_kernel, apply_relu=apply_relu)
    return pl.pallas_call(
        kern,
        out_shape=jax.ShapeDtypeStruct((2, n_pad, hid), jnp.bfloat16),
        grid_spec=pltpu.PrefetchScalarGridSpec(
            num_scalar_prefetch=2,
            grid=grid,
            in_specs=[
                # source feature slab (other node type), fully VMEM-resident
                pl.BlockSpec((None, n_pad, hid),
                             lambda t, i, off_r, idx_r: (1 - t, 0, 0)),
                # destination feature tile (this node type)
                pl.BlockSpec((None, tm, hid),
                             lambda t, i, off_r, idx_r: (t, i, 0)),
                # stacked [W_l ; W_r] for this node type (f32)
                pl.BlockSpec((None, 2 * hid, hid),
                             lambda t, i, off_r, idx_r: (t, 0, 0)),
                # bias for this node type (f32)
                pl.BlockSpec((None, 1, hid),
                             lambda t, i, off_r, idx_r: (t, 0, 0)),
            ],
            out_specs=pl.BlockSpec((None, tm, hid),
                                   lambda t, i, off_r, idx_r: (t, i, 0)),
            scratch_shapes=[pltpu.VMEM((tm, hid), jnp.float32)],
        ),
        compiler_params=pltpu.CompilerParams(
            dimension_semantics=("parallel", "parallel"),
            vmem_limit_bytes=vmem_limit),
    )(off, idx, x_stack, x_stack, w_stack, b_stack)


# ---------------------------------------------------------------------------
# Kernel 3: per-edge dot-product classifier, lane-dense output (edges on lanes).
#   hid reduction done as an MXU ones-matvec -> directly produces a (1, TE) row.
# ---------------------------------------------------------------------------
def edge_dot_kernel(u_ref, m_ref, o_ref):
    te = o_ref.shape[-1]
    p = u_ref[...].astype(jnp.float32) * m_ref[...].astype(jnp.float32)
    ones_row = jnp.ones((1, p.shape[-1]), jnp.float32)
    s = jnp.einsum("oh,eh->oe", ones_row, p,
                   preferred_element_type=jnp.float32)      # (1, TE)
    o_ref[...] = s.reshape(1, 1, te)


def edge_dot(u_feat, m_feat, vmem_limit):
    e_pad, hid = u_feat.shape
    te = _pick_tile(e_pad, (2048, 1024, 512, 256, 128))
    n_tiles = e_pad // te
    out = pl.pallas_call(
        edge_dot_kernel,
        out_shape=jax.ShapeDtypeStruct((n_tiles, 1, te), jnp.float32),
        grid=(n_tiles,),
        in_specs=[
            pl.BlockSpec((te, hid), lambda t: (t, 0)),
            pl.BlockSpec((te, hid), lambda t: (t, 0)),
        ],
        out_specs=pl.BlockSpec((1, 1, te), lambda t: (t, 0, 0)),
        compiler_params=pltpu.CompilerParams(
            dimension_semantics=("parallel",),
            vmem_limit_bytes=vmem_limit),
    )(u_feat, m_feat)
    return out.reshape(-1)


# ---------------------------------------------------------------------------
# Glue: CSR construction, parameter init, input preparation
# ---------------------------------------------------------------------------
def build_csr(dst, src, n_dst_pad, nnz_pad):
    """CSR neighbor lists (offsets length n_dst_pad+1, padded index array)."""
    dst = dst.astype(jnp.int32)
    src = src.astype(jnp.int32)
    order = jnp.argsort(dst)
    src_sorted = src[order]
    counts = jnp.bincount(dst, length=n_dst_pad).astype(jnp.int32)
    offsets = jnp.concatenate(
        [jnp.zeros((1,), jnp.int32), jnp.cumsum(counts).astype(jnp.int32)])
    idx = jnp.zeros((nnz_pad,), jnp.int32).at[: src_sorted.shape[0]].set(src_sorted)
    return offsets, idx


def init_params(key, hidden, n_user, n_movie, movie_feat):
    ks = jax.random.split(key, 16)

    def w(k, shape, scale=0.1):
        return (scale * jax.random.normal(k, shape)).astype(jnp.float32)

    def sage_params(keys):
        return {
            "wl_u": w(keys[0], (hidden, hidden)), "bl_u": w(keys[1], (1, hidden)),
            "wr_u": w(keys[2], (hidden, hidden)),
            "wl_m": w(keys[3], (hidden, hidden)), "bl_m": w(keys[4], (1, hidden)),
            "wr_m": w(keys[5], (hidden, hidden)),
        }

    return {
        "movie_lin_w": w(ks[0], (movie_feat, hidden)),
        "movie_lin_b": w(ks[1], (1, hidden)),
        "user_emb": w(ks[2], (n_user, hidden)),
        "movie_emb": w(ks[3], (n_movie, hidden)),
        "conv1": sage_params(ks[4:10]),
        "conv2": sage_params(ks[10:16]),
    }


def _conv_stack(p):
    w_u = jnp.concatenate([p["wl_u"], p["wr_u"]], axis=0)   # (2h, h)
    w_m = jnp.concatenate([p["wl_m"], p["wr_m"]], axis=0)
    return {"w": jnp.stack([w_u, w_m]).astype(jnp.float32),          # (2, 2h, h)
            "b": jnp.stack([p["bl_u"], p["bl_m"]]).astype(jnp.float32)}  # (2, 1, h)


def prepare_inputs(params, movie_x, user_node_id, movie_node_id,
                   edge_index, edge_label_index, n_user, n_movie):
    hid = params["user_emb"].shape[1]
    assert hid % LANE == 0, "hidden must be a multiple of 128 lanes"
    n_pad = _round_up(max(n_user, n_movie), LANE)   # common padded node count
    f_pad = _round_up(movie_x.shape[1], LANE)
    e_lab = edge_label_index.shape[1]
    e_pad = _round_up(e_lab, LANE)
    nnz = edge_index.shape[1]
    nnz_pad = _round_up(max(nnz, 1), LANE)
    bf16 = jnp.bfloat16

    x_user0 = _pad2d(params["user_emb"][user_node_id], n_pad, hid).astype(bf16)
    movie_x_p = _pad2d(movie_x, n_pad, f_pad).astype(bf16)
    w_mlin = _pad2d(params["movie_lin_w"], f_pad, hid).astype(bf16)
    b_mlin = params["movie_lin_b"].astype(jnp.float32)
    movie_emb_g = _pad2d(params["movie_emb"][movie_node_id], n_pad, hid).astype(bf16)

    # CSR per destination type: 0 = user-dst (movie->user edges), 1 = movie-dst
    off_u, idx_u = build_csr(edge_index[0], edge_index[1], n_pad, nnz_pad)
    off_m, idx_m = build_csr(edge_index[1], edge_index[0], n_pad, nnz_pad)
    off = jnp.stack([off_u, off_m])     # (2, n_pad+1) int32  (SMEM scalar prefetch)
    idx = jnp.stack([idx_u, idx_m])     # (2, nnz_pad) int32

    eli_pad = jnp.pad(edge_label_index,
                      ((0, 0), (0, e_pad - e_lab))).astype(jnp.int32)

    return dict(x_user0=x_user0, movie_x=movie_x_p, w_mlin=w_mlin, b_mlin=b_mlin,
                movie_emb=movie_emb_g, off=off, idx=idx,
                conv1=_conv_stack(params["conv1"]),
                conv2=_conv_stack(params["conv2"]),
                eli=eli_pad, n_label=e_lab,
                edge_index=edge_index.astype(jnp.int32))


# ---------------------------------------------------------------------------
# Full model forward (Pallas) and pure-JAX reference (matching numerics)
# ---------------------------------------------------------------------------
def model_forward(prep):
    vmem_limit = _vmem_limit_bytes()
    x_movie = movie_encode(prep["movie_x"], prep["w_mlin"], prep["b_mlin"],
                           prep["movie_emb"], vmem_limit)
    x_stack = jnp.stack([prep["x_user0"], x_movie])      # (2, n_pad, hid) bf16

    for conv, relu in ((prep["conv1"], True), (prep["conv2"], False)):
        x_stack = sage_layer(x_stack, prep["off"], prep["idx"],
                             conv["w"], conv["b"], apply_relu=relu,
                             vmem_limit=vmem_limit)
        # dropout(p=0.5) between layers is identity in eval mode

    x_user, x_movie = x_stack[0], x_stack[1]
    # TODO(synk): fuse these gathers into edge_dot via scalar-prefetched indices.
    u_feat = x_user[prep["eli"][0]]
    m_feat = x_movie[prep["eli"][1]]
    scores = edge_dot(u_feat, m_feat, vmem_limit)
    return scores[: prep["n_label"]]


def model_forward_ref(prep):
    f32, bf16 = jnp.float32, jnp.bfloat16
    x_movie = (jnp.dot(prep["movie_x"], prep["w_mlin"], preferred_element_type=f32)
               + prep["b_mlin"] + prep["movie_emb"].astype(f32)).astype(bf16)
    x_user = prep["x_user0"]
    n_pad, hid = x_user.shape
    ei = prep["edge_index"]

    def mean_agg(x_src, src_idx, dst_idx):
        s = jax.ops.segment_sum(x_src[src_idx].astype(f32), dst_idx,
                                num_segments=n_pad)
        deg = jax.ops.segment_sum(jnp.ones(dst_idx.shape, f32), dst_idx,
                                  num_segments=n_pad)
        return s / jnp.maximum(deg, 1.0)[:, None]

    def lin(agg, xd, w, b):
        return (jnp.dot(agg, w[:hid], preferred_element_type=f32)
                + jnp.dot(xd.astype(f32), w[hid:], preferred_element_type=f32) + b)

    for conv, relu in ((prep["conv1"], True), (prep["conv2"], False)):
        agg_u = mean_agg(x_movie, ei[1], ei[0])     # movie -> user
        agg_m = mean_agg(x_user, ei[0], ei[1])      # user  -> movie
        h_u = lin(agg_u, x_user, conv["w"][0], conv["b"][0])
        h_m = lin(agg_m, x_movie, conv["w"][1], conv["b"][1])
        if relu:
            h_u, h_m = jnp.maximum(h_u, 0.0), jnp.maximum(h_m, 0.0)
        x_user, x_movie = h_u.astype(bf16), h_m.astype(bf16)

    u = x_user[prep["eli"][0]].astype(f32)
    m = x_movie[prep["eli"][1]].astype(f32)
    return jnp.sum(u * m, axis=-1)[: prep["n_label"]]


if __name__ == "__main__":
    HIDDEN = 128          # lane-dense hidden dim (multiple of 128)
    N_USER = 48
    N_MOVIE = 40
    MOVIE_FEAT = 20
    N_EDGES = 96
    N_LABEL_EDGES = 24

    key = jax.random.PRNGKey(0)
    k_par, k_x, k_e0, k_e1, k_l0, k_l1 = jax.random.split(key, 6)

    params = init_params(k_par, HIDDEN, N_USER, N_MOVIE, MOVIE_FEAT)

    movie_x = jax.random.normal(k_x, (N_MOVIE, MOVIE_FEAT), jnp.float32)
    user_node_id = jnp.arange(N_USER, dtype=jnp.int32)
    movie_node_id = jnp.arange(N_MOVIE, dtype=jnp.int32)
    edge_index = jnp.stack([
        jax.random.randint(k_e0, (N_EDGES,), 0, N_USER),
        jax.random.randint(k_e1, (N_EDGES,), 0, N_MOVIE),
    ]).astype(jnp.int32)
    edge_label_index = jnp.stack([
        jax.random.randint(k_l0, (N_LABEL_EDGES,), 0, N_USER),
        jax.random.randint(k_l1, (N_LABEL_EDGES,), 0, N_MOVIE),
    ]).astype(jnp.int32)

    prep = prepare_inputs(params, movie_x, user_node_id, movie_node_id,
                          edge_index, edge_label_index, N_USER, N_MOVIE)

    pred = jax.block_until_ready(model_forward(prep))
    ref = jax.block_until_ready(model_forward_ref(prep))

    assert pred.shape == (N_LABEL_EDGES,)
    assert jnp.allclose(pred, ref, atol=2e-2, rtol=2e-2), (pred, ref)
    print("KERNEL_OK")
</pallas_src>

<mosaic_0001>
module attributes {stable_mosaic.version = 11 : i64} {
  func.func @movie_encode_kernel(%arg0: i32, %arg1: memref<128x128xbf16, #tpu.memory_space<vmem>>, %arg2: memref<128x128xbf16, #tpu.memory_space<vmem>>, %arg3: memref<1x128xf32, #tpu.memory_space<vmem>>, %arg4: memref<128x128xbf16, #tpu.memory_space<vmem>>, %arg5: memref<128x128xbf16, #tpu.memory_space<vmem>>) attributes {dimension_semantics = [#tpu.dimension_semantics<parallel>], iteration_bounds = array<i64: 1>, scalar_prefetch = 0 : i64, scratch_operands = 0 : i64, tpu.core_type = #tpu.core_type<tc>, window_params = [{transform_indices = @transform_0, window_bounds = array<i64: 128, 128>}, {pipeline_mode = #tpu.pipeline_mode<synchronous>, transform_indices = @transform_1, window_bounds = array<i64: 128, 128>}, {pipeline_mode = #tpu.pipeline_mode<synchronous>, transform_indices = @transform_2, window_bounds = array<i64: 1, 128>}, {transform_indices = @transform_3, window_bounds = array<i64: 128, 128>}, {transform_indices = @transform_4, window_bounds = array<i64: 128, 128>}]} {
    %c0 = arith.constant 0 : index
    %c0_0 = arith.constant 0 : index
    %0 = vector.load %arg1[%c0, %c0_0] : memref<128x128xbf16, #tpu.memory_space<vmem>>, vector<128x128xbf16>
    %c0_1 = arith.constant 0 : index
    %c0_2 = arith.constant 0 : index
    %1 = vector.load %arg2[%c0_1, %c0_2] : memref<128x128xbf16, #tpu.memory_space<vmem>>, vector<128x128xbf16>
    %cst = arith.constant dense<0.000000e+00> : vector<128x128xf32>
    %2 = tpu.matmul %0, %1, %cst {dimension_numbers = #tpu.dot_dimension_numbers<[1], [0], [0], [1], [0, 0, 1, 1], [], []>} : vector<128x128xbf16>, vector<128x128xbf16>, vector<128x128xf32> -> vector<128x128xf32>
    %c0_3 = arith.constant 0 : index
    %c0_4 = arith.constant 0 : index
    %3 = vector.load %arg3[%c0_3, %c0_4] : memref<1x128xf32, #tpu.memory_space<vmem>>, vector<1x128xf32>
    %4 = vector.broadcast %3 : vector<1x128xf32> to vector<128x128xf32>
    %5 = arith.addf %2, %4 : vector<128x128xf32>
    %c0_5 = arith.constant 0 : index
    %c0_6 = arith.constant 0 : index
    %6 = vector.load %arg4[%c0_5, %c0_6] : memref<128x128xbf16, #tpu.memory_space<vmem>>, vector<128x128xbf16>
    %7 = arith.extf %6 : vector<128x128xbf16> to vector<128x128xf32>
    %8 = arith.addf %5, %7 : vector<128x128xf32>
    %9 = arith.truncf %8 : vector<128x128xf32> to vector<128x128xbf16>
    %c0_7 = arith.constant 0 : index
    %c0_8 = arith.constant 0 : index
    %10 = vector.load %arg5[%c0_7, %c0_8] : memref<128x128xbf16, #tpu.memory_space<vmem>>, vector<128x128xbf16>
    tpu.vector_store %arg5[%c0_7, %c0_8], %9 {strides = array<i32>} : memref<128x128xbf16, #tpu.memory_space<vmem>>, vector<128x128xbf16>,
    return
  }
  func.func @transform_0(%arg0: i32) -> (i32, i32) {
    %c0_i32 = arith.constant 0 : i32
    %c0_i32_0 = arith.constant 0 : i32
    return %arg0, %c0_i32 : i32, i32
  }
  func.func @transform_1(%arg0: i32) -> (i32, i32) {
    %c0_i32 = arith.constant 0 : i32
    %c0_i32_0 = arith.constant 0 : i32
    %c0_i32_1 = arith.constant 0 : i32
    return %c0_i32, %c0_i32_0 : i32, i32
  }
  func.func @transform_2(%arg0: i32) -> (i32, i32) {
    %c0_i32 = arith.constant 0 : i32
    %c0_i32_0 = arith.constant 0 : i32
    %c0_i32_1 = arith.constant 0 : i32
    return %c0_i32, %c0_i32_0 : i32, i32
  }
  func.func @transform_3(%arg0: i32) -> (i32, i32) {
    %c0_i32 = arith.constant 0 : i32
    %c0_i32_0 = arith.constant 0 : i32
    return %arg0, %c0_i32 : i32, i32
  }
  func.func @transform_4(%arg0: i32) -> (i32, i32) {
    %c0_i32 = arith.constant 0 : i32
    %c0_i32_0 = arith.constant 0 : i32
    return %arg0, %c0_i32 : i32, i32
  }
}

</mosaic_0001>

<bundles_post_ra>
// kernel: tpu_custom_call.1
= control target key start
LH: loop header
LB: loop body
LE: loop exit
PB: predicated region body
PF: predicated region fallthrough
CT: control target
= control target key end

     0   :  { %9 = vsyncpa [#allocation3], 0  ;;  %s721_s0 = inlined_call_operand.hbm [shape: bf16[128,128], index: 0, kind: input, shape index: {}]   ;;  %s722_s1 = inlined_call_operand.hbm [shape: bf16[128,128], index: 1, kind: input, shape index: {}]   ;;  %s723_s2 = inlined_call_operand.vmem [shape: f32[1,128], index: 2, kind: input, shape index: {}]   ;;  %s724_s3 = inlined_call_operand.hbm [shape: bf16[128,128], index: 3, kind: input, shape index: {}]   ;;  %s725_s4 = inlined_call_operand.hbm [shape: bf16[128,128], index: 4, kind: output, shape index: {}]  }
   0x1   :  { %10 = vsyncpa [#allocation6], 0 }
   0x2   :  { %11 = vsyncpa [#allocation4], 0  ;;  %s29_s17 = sshll.u32 %s722_s1, 4  ;;  %s645_s18 = smov [#allocation5]   ;;  %s30_s17 = int_to_ptr.hbm [resolvable:$true] %s29_s17 }
   0x3   :  { %s31_s19 = sshll.u32 %s645_s18, 4  ;;  %s16_s22 = sshll.u32 %s721_s0, 4  ;;  %s32_s19 = int_to_ptr.vmem [resolvable:$true] %s31_s19  ;;  %s17_s22 = int_to_ptr.hbm [resolvable:$true] %s16_s22 }
   0x4   :  { %s646_s23 = smov 64   ;;  %s647_s24 = smov 4  }
   0x5   :  { %37 = dma.hbm_to_vmem [thread:$0]  %s30_s17, 1024, %s32_s19, [#allocation6], %s646_s23, %s646_s23, %s647_s24  }
   0x6   :  { %s648_s25 = smov [#allocation2]   ;;  %s44_s1 = sshll.u32 %s724_s3, 4  ;;  %s45_s1 = int_to_ptr.hbm [resolvable:$true] %s44_s1 }
   0x7   :  { %s18_s26 = sshll.u32 %s648_s25, 4  ;;  %s649_s0 = smov [#allocation7]   ;;  %s19_s26 = int_to_ptr.vmem [resolvable:$true] %s18_s26 }
   0x8   :  { %24 = dma.hbm_to_vmem [thread:$0]  %s17_s22, 1024, %s19_s26, [#allocation3], %s646_s23, %s646_s23, %s647_s24  }
   0x9   :  { %s46_s29 = sshll.u32 %s649_s0, 4  ;;  %s47_s29 = int_to_ptr.vmem [resolvable:$true] %s46_s29 }
   0xa   :  { %52 = dma.hbm_to_vmem [thread:$0]  %s45_s1, 1024, %s47_s29, [#allocation6], %s646_s23, %s646_s23, %s647_s24  }
   0xb   :  { %639 = dma.done.wait [#allocation3], 1024  }
   0xc   :  { %640 = vsyncadd [#allocation3], 4294966272 }
   0xd   :  { %641 = dma.done.wait [#allocation6], 2048  }
   0xe   :  { %642 = vsyncadd [#allocation6], 4294965248  ;;  %v425_v0 = vld [vmem:[#allocation5 + $0x38] sm:$0xff]  ;;  %v424_v1 = vld [vmem:[#allocation5 + $0x30] sm:$0xff]  ;;  %s332_s8 = sshll.u32 %s725_s4, 4  ;;  %s333_s8 = int_to_ptr.hbm [resolvable:$true] %s332_s8 }
   0xf   :  { %197 = vmatpush.bf16.msra.mxu0 %v425_v0  ;;  %512 = vmatpush.bf16.msra.mxu1 %v425_v0  ;;  %v423_v2 = vld [vmem:[#allocation5 + $0x28] sm:$0xff]  ;;  %v422_v3 = vld [vmem:[#allocation5 + $0x20] sm:$0xff]  ;;  %v421_v4 = vld [vmem:[#allocation5 + $0x18] sm:$0xff] }
  0x10   :  { %513 = vmatpush.bf16.msra.mxu2 %v425_v0  ;;  %514 = vmatpush.bf16.msra.mxu3 %v425_v0  ;;  %v420_v5 = vld [vmem:[#allocation5 + $0x10] sm:$0xff]  ;;  %v419_v6 = vld [vmem:[#allocation5 + $0x8] sm:$0xff]  ;;  %v418_v7 = vld [vmem:[#allocation5] sm:$0xff] }
  0x11   :  { %v410_v8 = vld [vmem:[#allocation2] sm:$0xff]  ;;  %v412_v9 = vld [vmem:[#allocation2 + $0x10] sm:$0xff]  ;;  %v411_v12 = vld [vmem:[#allocation2 + $0x8] sm:$0xff] }
  0x12   :  { %v414_v10 = vld [vmem:[#allocation2 + $0x20] sm:$0xff]  ;;  %v416_v11 = vld [vmem:[#allocation2 + $0x30] sm:$0xff]  ;;  %v413_v13 = vld [vmem:[#allocation2 + $0x18] sm:$0xff] }
  0x13   :  { %198 = vmatpush.bf16.msra.mxu0 %v424_v1  ;;  %515 = vmatpush.bf16.msra.mxu1 %v424_v1  ;;  %v415_v14 = vld [vmem:[#allocation2 + $0x28] sm:$0xff]  ;;  %v417_v15 = vld [vmem:[#allocation2 + $0x38] sm:$0xff]  ;;  %v697_v18 = vld [vmem:[%s723_s2] ss:$0 sm:$0xff]  ;;  %s650_s2 = smov [#allocation8]  }
  0x14   :  { %516 = vmatpush.bf16.msra.mxu2 %v424_v1  ;;  %517 = vmatpush.bf16.msra.mxu3 %v424_v1  ;;  %v427_v19 = vld [vmem:[#allocation7] sm:$0xff]   ;;  %v499_v20 = vld [vmem:[#allocation7 + $0x10] sm:$0xff]   ;;  %v498_v57 = vld [vmem:[#allocation7 + $0x8] sm:$0xff]   ;;  %s330_s5 = sshll.u32 %s650_s2, 4  ;;  %s331_s5 = int_to_ptr.vmem [resolvable:$true] %s330_s5 }
  0x15   :  { %v428_v21 = vunpack.c.l.bf16 %v427_v19  ;;  %v436_v22 = vunpack.c.l.bf16 %v499_v20  ;;  %v429_v27 = vunpack.c.h.bf16 %v427_v19  ;;  %v437_v28 = vunpack.c.h.bf16 %v499_v20  ;;  %v501_v33 = vld [vmem:[#allocation7 + $0x20] sm:$0xff]   ;;  %v503_v34 = vld [vmem:[#allocation7 + $0x30] sm:$0xff]   ;;  %v500_v58 = vld [vmem:[#allocation7 + $0x18] sm:$0xff]  }
  0x16   :  { %v444_v39 = vunpack.c.l.bf16 %v501_v33  ;;  %v452_v40 = vunpack.c.l.bf16 %v503_v34  ;;  %v445_v45 = vunpack.c.h.bf16 %v501_v33  ;;  %v453_v46 = vunpack.c.h.bf16 %v503_v34 }
  0x17   :  { %199 = vmatpush.bf16.msra.mxu0 %v423_v2  ;;  %518 = vmatpush.bf16.msra.mxu1 %v423_v2  ;;  %v432_v61 = vunpack.c.l.bf16 %v498_v57  ;;  %v440_v62 = vunpack.c.l.bf16 %v500_v58 }
  0x18   :  { %519 = vmatpush.bf16.msra.mxu2 %v423_v2  ;;  %520 = vmatpush.bf16.msra.mxu3 %v423_v2 }
  0x1b   :  { %200 = vmatpush.bf16.msra.mxu0 %v422_v3  ;;  %521 = vmatpush.bf16.msra.mxu1 %v422_v3 }
  0x1c   :  { %522 = vmatpush.bf16.msra.mxu2 %v422_v3  ;;  %523 = vmatpush.bf16.msra.mxu3 %v422_v3  ;;  %v433_v3 = vunpack.c.h.bf16 %v498_v57 }
  0x1f   :  { %201 = vmatpush.bf16.msra.mxu0 %v421_v4  ;;  %524 = vmatpush.bf16.msra.mxu1 %v421_v4 }
  0x20   :  { %525 = vmatpush.bf16.msra.mxu2 %v421_v4  ;;  %526 = vmatpush.bf16.msra.mxu3 %v421_v4  ;;  %v441_v4 = vunpack.c.h.bf16 %v500_v58 }
  0x23   :  { %202 = vmatpush.bf16.msra.mxu0 %v420_v5  ;;  %527 = vmatpush.bf16.msra.mxu1 %v420_v5 }
  0x24   :  { %528 = vmatpush.bf16.msra.mxu2 %v420_v5  ;;  %529 = vmatpush.bf16.msra.mxu3 %v420_v5 }
  0x27   :  { %203 = vmatpush.bf16.msra.mxu0 %v419_v6  ;;  %530 = vmatpush.bf16.msra.mxu1 %v419_v6 }
  0x28   :  { %531 = vmatpush.bf16.msra.mxu2 %v419_v6  ;;  %532 = vmatpush.bf16.msra.mxu3 %v419_v6 }
  0x2b   :  { %204 = vmatpush.bf16.msra.mxu0 %v418_v7  ;;  %533 = vmatpush.bf16.msra.mxu1 %v418_v7 }
  0x2c   :  { %534 = vmatpush.bf16.msra.mxu2 %v418_v7  ;;  %535 = vmatpush.bf16.msra.mxu3 %v418_v7 }
  0x2e   :  { %205 = vmatmul.bf16.vlgmr.msra.gmra.mxu0 %v410_v8  ;;  %215 = vmatmul.bf16.vlgmr.msra.gmra.mxu1 %v412_v9  ;;  %v502_v9 = vld [vmem:[#allocation7 + $0x28] sm:$0xff]  }
  0x2f   :  { %225 = vmatmul.bf16.vlgmr.msra.gmra.mxu2 %v414_v10  ;;  %235 = vmatmul.bf16.vlgmr.msra.gmra.mxu3 %v416_v11  ;;  %v504_v10 = vld [vmem:[#allocation7 + $0x38] sm:$0xff]  }
  0x3e   :  { %210 = vmatmul.bf16.gmra.mxu0 %v411_v12  ;;  %220 = vmatmul.bf16.gmra.mxu1 %v413_v13 }
  0x3f   :  { %230 = vmatmul.bf16.gmra.mxu2 %v415_v14  ;;  %240 = vmatmul.bf16.gmra.mxu3 %v417_v15  ;;  %v448_v15 = vunpack.c.l.bf16 %v502_v9 }
  0xab   :  { %v206_v16 = vpop.f32.mrf.mxu0  ;;  %v216_v17 = vpop.f32.mrf.mxu1 }
  0xac   :  { %v207_v23 = vadd.f32 %v697_v18, %v206_v16  ;;  %v217_v24 = vadd.f32 %v697_v18, %v216_v17  ;;  %v456_v16 = vunpack.c.l.bf16 %v504_v10 }
  0xae   :  { %v278_v35 = vadd.f32 %v428_v21, %v207_v23  ;;  %v282_v36 = vadd.f32 %v436_v22, %v217_v24  ;;  %v449_v22 = vunpack.c.h.bf16 %v502_v9  ;;  %v457_v23 = vunpack.c.h.bf16 %v504_v10 }
  0xb2   :  { %v226_v25 = vpop.f32.mrf.mxu2  ;;  %v236_v26 = vpop.f32.mrf.mxu3 }
  0xb3   :  { %v208_v29 = vpop.f32.mrf.mxu0  ;;  %v218_v30 = vpop.f32.mrf.mxu1  ;;  %v227_v43 = vadd.f32 %v697_v18, %v226_v25  ;;  %v237_v44 = vadd.f32 %v697_v18, %v236_v26 }
  0xb4   :  { %v209_v31 = vadd.f32 %v697_v18, %v208_v29  ;;  %v219_v32 = vadd.f32 %v697_v18, %v218_v30 }
  0xb5   :  { %v286_v53 = vadd.f32 %v444_v39, %v227_v43  ;;  %v290_v54 = vadd.f32 %v452_v40, %v237_v44 }
  0xb6   :  { %v279_v37 = vadd.f32 %v429_v27, %v209_v31  ;;  %v283_v38 = vadd.f32 %v437_v28, %v219_v32 }
  0xb8   :  { %v461_v41 = vpack.c.bf16 %v279_v37, %v278_v35  ;;  %v471_v42 = vpack.c.bf16 %v283_v38, %v282_v36 }
  0xba   :  { %462 = vst [vmem:[#allocation8] sm:$0xff] %v461_v41   ;;  %v228_v47 = vpop.f32.mrf.mxu2  ;;  %v238_v48 = vpop.f32.mrf.mxu3 }
  0xbb   :  { %506 = vst [vmem:[#allocation8 + $0x10] sm:$0xff] %v471_v42   ;;  %v229_v49 = vadd.f32 %v697_v18, %v228_v47  ;;  %v239_v50 = vadd.f32 %v697_v18, %v238_v48  ;;  %v211_v51 = vpop.f32.mrf.mxu0  ;;  %v221_v52 = vpop.f32.mrf.mxu1 }
  0xbc   :  { %v212_v63 = vadd.f32 %v697_v18, %v211_v51  ;;  %v222_v0 = vadd.f32 %v697_v18, %v221_v52 }
  0xbd   :  { %v287_v55 = vadd.f32 %v445_v45, %v229_v49  ;;  %v291_v56 = vadd.f32 %v453_v46, %v239_v50 }
  0xbe   :  { %v280_v11 = vadd.f32 %v432_v61, %v212_v63  ;;  %v284_v12 = vadd.f32 %v440_v62, %v222_v0 }
  0xbf   :  { %v481_v59 = vpack.c.bf16 %v287_v55, %v286_v53  ;;  %v491_v60 = vpack.c.bf16 %v291_v56, %v290_v54 }
  0xc1   :  { %508 = vst [vmem:[#allocation8 + $0x20] sm:$0xff] %v481_v59  }
  0xc2   :  { %510 = vst [vmem:[#allocation8 + $0x30] sm:$0xff] %v491_v60   ;;  %v231_v1 = vpop.f32.mrf.mxu2  ;;  %v241_v2 = vpop.f32.mrf.mxu3 }
  0xc3   :  { %v213_v5 = vpop.f32.mrf.mxu0  ;;  %v223_v6 = vpop.f32.mrf.mxu1  ;;  %v232_v20 = vadd.f32 %v697_v18, %v231_v1  ;;  %v242_v21 = vadd.f32 %v697_v18, %v241_v2 }
  0xc4   :  { %v214_v7 = vadd.f32 %v697_v18, %v213_v5  ;;  %v224_v8 = vadd.f32 %v697_v18, %v223_v6 }
  0xc5   :  { %v288_v28 = vadd.f32 %v448_v15, %v232_v20  ;;  %v292_v29 = vadd.f32 %v456_v16, %v242_v21 }
  0xc6   :  { %v281_v13 = vadd.f32 %v433_v3, %v214_v7  ;;  %v285_v14 = vadd.f32 %v441_v4, %v224_v8 }
  0xc8   :  { %v466_v17 = vpack.c.bf16 %v281_v13, %v280_v11  ;;  %v476_v19 = vpack.c.bf16 %v285_v14, %v284_v12 }
  0xca   :  { %505 = vst [vmem:[#allocation8 + $0x8] sm:$0xff] %v466_v17   ;;  %v233_v24 = vpop.f32.mrf.mxu2  ;;  %v243_v25 = vpop.f32.mrf.mxu3 }
  0xcb   :  { %507 = vst [vmem:[#allocation8 + $0x18] sm:$0xff] %v476_v19   ;;  %v234_v26 = vadd.f32 %v697_v18, %v233_v24  ;;  %v244_v27 = vadd.f32 %v697_v18, %v243_v25 }
  0xcd   :  { %v289_v30 = vadd.f32 %v449_v22, %v234_v26  ;;  %v293_v31 = vadd.f32 %v457_v23, %v244_v27 }
  0xcf   :  { %v486_v32 = vpack.c.bf16 %v289_v30, %v288_v28  ;;  %v496_v33 = vpack.c.bf16 %v293_v31, %v292_v29 }
  0xd1   :  { %509 = vst [vmem:[#allocation8 + $0x28] sm:$0xff] %v486_v32  }
  0xd2   :  { %511 = vst [vmem:[#allocation8 + $0x38] sm:$0xff] %v496_v33  }
  0xd3   :  { %338 = dma.vmem_to_hbm [thread:$0]  %s331_s5, 1024, %s333_s8, [#allocation4], %s646_s23, %s646_s23, %s647_s24  }
  0xd4   :  { %643 = dma.done.wait [#allocation4], 1024  }
  0xd5   :  { %644 = vsyncadd [#allocation4], 4294966272 }
  0xd6   :  { %343 = vsyncpa [#allocation3], 1 }
  0xd7   :  { %344 = vsyncpa [#allocation6], 1 }
  0xd8   :  { %345 = vsyncpa [#allocation4], 1 }

</bundles_post_ra>
